<compile_context>
chip_gen: v7x
topology: tpu7x:2x2x1
jax: 0.10.0
libtpu: 0.0.40
codegen_flags: <defaults>
</compile_context>

<pallas_src>
import jax
import jax.numpy as jnp
from jax.experimental import pallas as pl
from jax.experimental.pallas import tpu as pltpu


def _apply_scale_kernel(scale_ref, low_ref, high_ref, out_ref):
    # scale_ref: (ROWS_TILE, 1); low/high/out: (ROWS_TILE, HW_TILE)
    # Pure streaming elementwise: out = low * scale + high (scale broadcasts
    # over the lane/spatial axis).
    out_ref[...] = (low_ref[...] * scale_ref[...] + high_ref[...]).astype(out_ref.dtype)


def _pick_tile(total, unit, cap):
    """Largest divisor of `total` that is a multiple of `unit` and <= `cap`.

    Falls back to the full extent (always a legal BlockSpec block size)."""
    if total % unit != 0:
        return total  # full extent — legal since it equals the array dim
    best = unit
    for m in range(unit, min(total, cap) + 1, unit):
        if total % m == 0:
            best = m
    return best


@jax.jit
def ch_attn_block(low, high, w1, b1, w2, b2):
    """low, high: [N, C, H, W] (NCHW, matching PyTorch).
       w1: [C, 2C, 1, 1], b1: [C], w2: [C, C, 1, 1], b2: [C]."""
    N, C, H, W = low.shape
    HW = H * W
    ROWS = N * C

    # ---------------- Phase 1: per-(n,c) scale, batched over N (plain XLA) ----
    # Keep the pooling / matmuls / sigmoid in f32 regardless of I/O dtype.
    p_low = jnp.mean(low.reshape(N, C, HW).astype(jnp.float32), axis=-1)    # (N, C)
    p_high = jnp.mean(high.reshape(N, C, HW).astype(jnp.float32), axis=-1)  # (N, C)
    pooled = jnp.concatenate([p_low, p_high], axis=-1)                      # (N, 2C)

    w1m = w1[:, :, 0, 0].astype(jnp.float32)   # (C, 2C)
    w2m = w2[:, :, 0, 0].astype(jnp.float32)   # (C, C)
    hidden = jnp.maximum(pooled @ w1m.T + b1.astype(jnp.float32), 0.0)      # (N, C)
    scale = jax.nn.sigmoid(hidden @ w2m.T + b2.astype(jnp.float32))         # (N, C)
    scale_rows = scale.reshape(ROWS, 1).astype(low.dtype)                   # (N*C, 1)

    # ---------------- Phase 2: streaming apply kernel (Pallas) ----------------
    low_r = low.reshape(ROWS, HW)
    high_r = high.reshape(ROWS, HW)

    rows_tile = _pick_tile(ROWS, 8, 128)     # sublane-full row tiles
    hw_tile = _pick_tile(HW, 128, 4096)      # lane-dense spatial tiles

    grid = (ROWS // rows_tile, HW // hw_tile)

    out = pl.pallas_call(
        _apply_scale_kernel,
        out_shape=jax.ShapeDtypeStruct((ROWS, HW), low.dtype),
        grid=grid,
        in_specs=[
            pl.BlockSpec((rows_tile, 1), lambda r, s: (r, 0)),         # scale
            pl.BlockSpec((rows_tile, hw_tile), lambda r, s: (r, s)),   # low
            pl.BlockSpec((rows_tile, hw_tile), lambda r, s: (r, s)),   # high
        ],
        out_specs=pl.BlockSpec((rows_tile, hw_tile), lambda r, s: (r, s)),
        compiler_params=pltpu.CompilerParams(
            dimension_semantics=("parallel", "parallel"),
            vmem_limit_bytes=32 * 1024 * 1024,
        ),
    )(scale_rows, low_r, high_r)

    return out.reshape(N, C, H, W)


def _reference(low, high, w1, b1, w2, b2):
    # Pure-JAX reference of the PyTorch forward.
    concat = jnp.concatenate([low, high], axis=1)                 # [N, 2C, H, W]
    pooled = jnp.mean(concat, axis=(2, 3))                        # [N, 2C]
    h = jnp.maximum(pooled @ w1[:, :, 0, 0].T + b1, 0.0)          # [N, C]
    scale = jax.nn.sigmoid(h @ w2[:, :, 0, 0].T + b2)             # [N, C]
    scale = scale[:, :, None, None]
    return low * scale + high


if __name__ == "__main__":
    N, C, H, W = 2, 4, 16, 16  # x shape: [2, 4, 16, 16]

    key = jax.random.PRNGKey(0)
    k_low, k_high, k_w1, k_b1, k_w2, k_b2 = jax.random.split(key, 6)

    low = jax.random.normal(k_low, (N, C, H, W), dtype=jnp.float32)
    high = jax.random.normal(k_high, (N, C, H, W), dtype=jnp.float32)

    # Deterministic parameter init (shapes match nn.Conv2d in __init__).
    w1 = jax.random.normal(k_w1, (C, 2 * C, 1, 1), dtype=jnp.float32) * 0.1
    b1 = jax.random.normal(k_b1, (C,), dtype=jnp.float32) * 0.1
    w2 = jax.random.normal(k_w2, (C, C, 1, 1), dtype=jnp.float32) * 0.1
    b2 = jax.random.normal(k_b2, (C,), dtype=jnp.float32) * 0.1

    out = ch_attn_block(low, high, w1, b1, w2, b2)
    out = jax.block_until_ready(out)

    ref = _reference(low, high, w1, b1, w2, b2)
    assert out.shape == (N, C, H, W)
    assert jnp.allclose(out, ref, atol=1e-4, rtol=1e-4), "mismatch vs reference"

    print("KERNEL_OK")
</pallas_src>

<mosaic_0001>
module attributes {stable_mosaic.version = 11 : i64} {
  func.func @_apply_scale_kernel(%arg0: i32, %arg1: i32, %arg2: memref<8x1xf32, #tpu.memory_space<vmem>>, %arg3: memref<8x256xf32, #tpu.memory_space<vmem>>, %arg4: memref<8x256xf32, #tpu.memory_space<vmem>>, %arg5: memref<8x256xf32, #tpu.memory_space<vmem>>) attributes {dimension_semantics = [#tpu.dimension_semantics<parallel>, #tpu.dimension_semantics<parallel>], iteration_bounds = array<i64: 1, 1>, scalar_prefetch = 0 : i64, scratch_operands = 0 : i64, tpu.core_type = #tpu.core_type<tc>, window_params = [{transform_indices = @transform_0, window_bounds = array<i64: 8, 1>}, {transform_indices = @transform_1, window_bounds = array<i64: 8, 256>}, {transform_indices = @transform_2, window_bounds = array<i64: 8, 256>}, {transform_indices = @transform_3, window_bounds = array<i64: 8, 256>}]} {
    %c0 = arith.constant 0 : index
    %c0_0 = arith.constant 0 : index
    %0 = vector.load %arg3[%c0, %c0_0] : memref<8x256xf32, #tpu.memory_space<vmem>>, vector<8x256xf32>
    %c0_1 = arith.constant 0 : index
    %c0_2 = arith.constant 0 : index
    %1 = vector.load %arg2[%c0_1, %c0_2] : memref<8x1xf32, #tpu.memory_space<vmem>>, vector<8x1xf32>
    %2 = vector.broadcast %1 : vector<8x1xf32> to vector<8x256xf32>
    %3 = arith.mulf %0, %2 : vector<8x256xf32>
    %c0_3 = arith.constant 0 : index
    %c0_4 = arith.constant 0 : index
    %4 = vector.load %arg4[%c0_3, %c0_4] : memref<8x256xf32, #tpu.memory_space<vmem>>, vector<8x256xf32>
    %5 = arith.addf %3, %4 : vector<8x256xf32>
    %c0_5 = arith.constant 0 : index
    %c0_6 = arith.constant 0 : index
    %6 = vector.load %arg5[%c0_5, %c0_6] : memref<8x256xf32, #tpu.memory_space<vmem>>, vector<8x256xf32>
    tpu.vector_store %arg5[%c0_5, %c0_6], %5 {strides = array<i32>} : memref<8x256xf32, #tpu.memory_space<vmem>>, vector<8x256xf32>,
    return
  }
  func.func @transform_0(%arg0: i32, %arg1: i32) -> (i32, i32) {
    %c0_i32 = arith.constant 0 : i32
    %c0_i32_0 = arith.constant 0 : i32
    return %arg0, %c0_i32 : i32, i32
  }
  func.func @transform_1(%arg0: i32, %arg1: i32) -> (i32, i32) {
    %c0_i32 = arith.constant 0 : i32
    return %arg0, %arg1 : i32, i32
  }
  func.func @transform_2(%arg0: i32, %arg1: i32) -> (i32, i32) {
    %c0_i32 = arith.constant 0 : i32
    return %arg0, %arg1 : i32, i32
  }
  func.func @transform_3(%arg0: i32, %arg1: i32) -> (i32, i32) {
    %c0_i32 = arith.constant 0 : i32
    return %arg0, %arg1 : i32, i32
  }
}

</mosaic_0001>

<bundles_post_ra>
// kernel: ch_attn_block.1
= control target key start
LH: loop header
LB: loop body
LE: loop exit
PB: predicated region body
PF: predicated region fallthrough
CT: control target
= control target key end

     0   :  { %v36_v0 = vmov 0   ;;  %s78_s0 = inlined_call_operand.vmem [shape: f32[8,1], index: 0, kind: input, shape index: {}]   ;;  %s79_s1 = inlined_call_operand.vmem [shape: f32[8,256], index: 1, kind: input, shape index: {}]   ;;  %s80_s2 = inlined_call_operand.vmem [shape: f32[8,256], index: 2, kind: input, shape index: {}]   ;;  %s81_s3 = inlined_call_operand.vmem [shape: f32[8,256], index: 3, kind: output, shape index: {}]  }
   0x1   :  { %35 = vset.pattern.permute.xlu0 %v36_v0  ;;  %v16_v1 = vld [vmem:[%s78_s0] sm:$0xff]  ;;  %v15_v3 = vld [vmem:[%s79_s1 + $0x8] sm:$0xff] }
   0x2   :  { %19 = vperm.xlu0 %35, %v16_v1   ;;  %v14_v2 = vld [vmem:[%s79_s1] sm:$0xff]  ;;  %v25_v5 = vld [vmem:[%s80_s2 + $0x8] sm:$0xff] }
   0x3   :  { %v24_v4 = vld [vmem:[%s80_s2] sm:$0xff] }
  0x81   :  { %v20_v6 = vpop.permute.xlu0 %19 }
  0x82   :  { %v22_v7 = vmul.f32 %v20_v6, %v14_v2  ;;  %v23_v8 = vmul.f32 %v20_v6, %v15_v3 }
  0x84   :  { %v26_v9 = vadd.f32 %v24_v4, %v22_v7  ;;  %v27_v10 = vadd.f32 %v25_v5, %v23_v8 }
  0x86   :  { %28 = vst [vmem:[%s81_s3] sm:$0xff] %v26_v9  ;;  %29 = vst [vmem:[%s81_s3 + $0x8] sm:$0xff] %v27_v10 }

</bundles_post_ra>
